<compile_context>
chip_gen: v6e
topology: v6e:2x2x1
jax: 0.10.0
libtpu: 0.0.40
codegen_flags: <defaults>
</compile_context>

<pallas_src>
import jax
import jax.numpy as jnp
from jax.experimental import pallas as pl
from jax.experimental.pallas import tpu as pltpu


def _gelu_impl(x):
    # Megatron / flagai gelu_impl (tanh approximation), computed in f32.
    return 0.5 * x * (1.0 + jnp.tanh(
        0.7978845608028654 * x * (1.0 + 0.044715 * x * x)))


def _mlp_kernel(x_ref, w1_ref, b1_ref, w2_ref, b2_ref, o_ref, acc_ref):
    # x_ref:  (tm, H)    compute dtype (bf16)
    # w1_ref: (H, tk4)   compute dtype  -- streamed over the 4H axis
    # b1_ref: (1, tk4)   f32
    # w2_ref: (tk4, H)   compute dtype  -- streamed over the 4H axis
    # b2_ref: (1, H)     f32
    # o_ref:  (tm, H)    output dtype (resident across the 4H axis)
    # acc_ref:(tm, H)    f32 accumulator scratch
    j = pl.program_id(1)

    # First matmul slice: (tm, H) @ (H, tk4) -> f32; bias + GELU in f32.
    h = jnp.dot(x_ref[...], w1_ref[...],
                preferred_element_type=jnp.float32) + b1_ref[...]
    g = _gelu_impl(h)

    # Partial second matmul: (tm, tk4) @ (tk4, H) in f32.
    p = jnp.dot(g.astype(w2_ref.dtype), w2_ref[...],
                preferred_element_type=jnp.float32)

    # Initialize the accumulator from the first partial product (saves the
    # zero-fill store + load/add of the j==0 step).
    @pl.when(j == 0)
    def _():
        acc_ref[...] = p

    @pl.when(j > 0)
    def _():
        acc_ref[...] += p

    @pl.when(j == pl.num_programs(1) - 1)
    def _():
        o_ref[...] = (acc_ref[...] + b2_ref[...]).astype(o_ref.dtype)


def _round_up(x, m):
    return (x + m - 1) // m * m


def _chip_profile():
    """Per-generation tile defaults and VMEM budget."""
    cap = None
    try:
        cap = int(pltpu.get_tpu_info().vmem_capacity_bytes)
    except Exception:
        cap = None
    kind = ""
    try:
        kind = jax.devices()[0].device_kind.lower()
    except Exception:
        kind = ""

    is_v7x = ("v7" in kind) or ("tpu7" in kind) or (
        cap is not None and cap <= 64 * 1024 * 1024)

    if cap is None:
        cap = 64 * 1024 * 1024 if is_v7x else 128 * 1024 * 1024

    if is_v7x:
        # 64 MiB VMEM/TC, very high HBM BW -> medium tiles, tight budget
        # (leave room for Mosaic internal scratch and the f32 temporaries).
        return dict(tm=512, tk4=512, budget=int(0.85 * cap), is_v7x=True)
    if "v5" in kind:
        # v5e: roofline crossover ~240 flops/byte; tm=512 is comfortably
        # compute-bound, larger only adds store traffic (single vst slot).
        return dict(tm=512, tk4=1024, budget=int(0.80 * cap), is_v7x=False)
    # v6e (or unknown 128 MiB-class chip): needs AI ~650 flops/byte.
    return dict(tm=1024, tk4=1024, budget=int(0.80 * cap), is_v7x=False)


def _pick_tk4(H4, want):
    """Largest multiple of 128 that divides H4 and is <= want."""
    want = max(128, min(want, H4))
    if H4 % 128 != 0:
        # Odd 4H size (tiny models only): single block over the full 4H dim.
        return H4
    t = (want // 128) * 128
    while t >= 128:
        if H4 % t == 0:
            return t
        t -= 128
    return 128


def _vmem_need(tm, tk4, H, H4, csz, osz):
    """Estimated scoped-VMEM bytes for the chosen tiling."""
    need = 2 * (tm * H * csz          # x tile (double-buffered)
                + H * tk4 * csz       # W1 slice
                + tk4 * 4             # b1 slice (f32)
                + tk4 * H * csz       # W2 slice
                + H * 4               # b2 (f32)
                + tm * H * osz)       # out tile
    need += tm * H * 4                # f32 accumulator scratch
    need += 2 * tm * tk4 * 4          # f32 h/g GELU intermediates
    need += 2 * 1024 * 1024           # Mosaic internal scratch headroom
    return need


def mlp_forward(x, w1, b1, w2, b2, *, tm=None, tk4=None,
                compute_dtype=jnp.bfloat16):
    """Fused MLP: gelu(x @ w1 + b1) @ w2 + b2  (dropout = identity / eval).

    x : (M, H)   activations (output matches x.dtype)
    w1: (H, 4H)  dense_h_to_4h.weight, pre-transposed
    b1: (4H,)
    w2: (4H, H)  dense_4h_to_h.weight, pre-transposed
    b2: (H,)
    """
    M, H = x.shape
    H4 = w1.shape[1]
    out_dtype = x.dtype

    prof = _chip_profile()
    if tm is None:
        tm = prof["tm"]
    if tk4 is None:
        tk4 = prof["tk4"]
    budget = prof["budget"]
    is_v7x = prof["is_v7x"]

    csz = jnp.dtype(compute_dtype).itemsize
    osz = jnp.dtype(out_dtype).itemsize

    # Row tile: large enough to feed the MXU, clamped for small inputs,
    # always a multiple of 16 (bf16 sublane packing granule).
    tm = max(16, min(tm, _round_up(M, 16)))
    tm = _round_up(tm, 16)

    # 4H reduction tile: largest 128-multiple divisor of 4H <= requested.
    tk4 = _pick_tk4(H4, tk4)

    # Shrink tiles until the VMEM estimate fits the per-chip budget
    # (tk4 first -- it does not affect arithmetic intensity -- then tm).
    while _vmem_need(tm, tk4, H, H4, csz, osz) > budget:
        if tk4 > 128 and (tk4 // 2) % 128 == 0 and H4 % (tk4 // 2) == 0:
            tk4 //= 2
        elif tm > 16:
            tm = max(16, _round_up(tm // 2, 16))
        else:
            break

    m_pad = _round_up(M, tm)
    grid_m = m_pad // tm

    # v7x: keep the parallel row-tile count even so both TensorCores work.
    if is_v7x and grid_m > 1 and grid_m % 2 == 1:
        grid_m += 1
        tm = max(16, _round_up(-(-M // grid_m), 16))
        m_pad = grid_m * tm

    num_k = H4 // tk4

    # Pad the token dim so every grid step loads/stores a full tile.
    if m_pad != M:
        x = jnp.pad(x, ((0, m_pad - M), (0, 0)))

    # Feed the MXU in bf16; biases / GELU / accumulation stay in f32.
    x_c = x.astype(compute_dtype)
    w1_c = w1.astype(compute_dtype)
    w2_c = w2.astype(compute_dtype)
    b1_2d = b1.reshape(1, H4).astype(jnp.float32)
    b2_2d = b2.reshape(1, H).astype(jnp.float32)

    grid = (grid_m, num_k)

    need = _vmem_need(tm, tk4, H, H4, csz, osz)
    vmem_bytes = min(int(need * 1.1) + (2 << 20), budget)
    vmem_bytes = max(vmem_bytes, min(budget, 16 * 1024 * 1024))

    # CostEstimate: weights (and biases) are streamed once per row-tile pass.
    passes = grid_m
    cost = pl.CostEstimate(
        flops=2 * m_pad * H * H4 * 2,
        transcendentals=m_pad * H4,
        bytes_accessed=(m_pad * H * csz
                        + passes * (H * H4 + H4 * H) * csz
                        + passes * (H4 + H) * 4
                        + m_pad * H * osz),
    )

    out = pl.pallas_call(
        _mlp_kernel,
        out_shape=jax.ShapeDtypeStruct((m_pad, H), out_dtype),
        grid_spec=pltpu.PrefetchScalarGridSpec(
            num_scalar_prefetch=0,
            grid=grid,
            in_specs=[
                pl.BlockSpec((tm, H), lambda i, j: (i, 0)),    # x row tile
                pl.BlockSpec((H, tk4), lambda i, j: (0, j)),   # W1 slice
                pl.BlockSpec((1, tk4), lambda i, j: (0, j)),   # b1 slice
                pl.BlockSpec((tk4, H), lambda i, j: (j, 0)),   # W2 slice
                pl.BlockSpec((1, H), lambda i, j: (0, 0)),     # b2
            ],
            out_specs=pl.BlockSpec((tm, H), lambda i, j: (i, 0)),
            scratch_shapes=[pltpu.VMEM((tm, H), jnp.float32)],
        ),
        compiler_params=pltpu.CompilerParams(
            dimension_semantics=("parallel", "arbitrary"),
            vmem_limit_bytes=vmem_bytes),
        cost_estimate=cost,
    )(x_c, w1_c, b1_2d, w2_c, b2_2d)

    if m_pad != M:
        out = out[:M]
    return out


if __name__ == "__main__":
    # Small shapes consistent with the module: batch=2, seq=8, hidden=32.
    B, S, H = 2, 8, 32
    H4 = 4 * H

    key = jax.random.PRNGKey(0)
    kx, k1, k2 = jax.random.split(key, 3)

    x = jax.random.normal(kx, (B, S, H), dtype=jnp.float32)

    # Deterministic xavier-normal-ish init (std = sqrt(2/(fan_in+fan_out)));
    # biases zero, as in the module.
    std1 = (2.0 / (H + H4)) ** 0.5
    std2 = (2.0 / (H4 + H)) ** 0.5
    # PyTorch stores dense_h_to_4h.weight as (4H, H); we pass its transpose.
    w1_t = jax.random.normal(k1, (H, H4), dtype=jnp.float32) * std1
    b1 = jnp.zeros((H4,), dtype=jnp.float32)
    w2_t = jax.random.normal(k2, (H4, H), dtype=jnp.float32) * std2
    b2 = jnp.zeros((H,), dtype=jnp.float32)

    x2d = x.reshape(B * S, H)
    out2d = mlp_forward(x2d, w1_t, b1, w2_t, b2)
    out = out2d.reshape(B, S, H)
    jax.block_until_ready(out)

    # Reference in plain JAX, emulating the kernel's bf16 MXU inputs
    # (bias add / GELU / accumulation in f32, exactly as in the kernel).
    f32 = jnp.float32
    xb = x2d.astype(jnp.bfloat16).astype(f32)
    w1b = w1_t.astype(jnp.bfloat16).astype(f32)
    w2b = w2_t.astype(jnp.bfloat16).astype(f32)
    ref_h = xb @ w1b + b1
    ref_g = 0.5 * ref_h * (1.0 + jnp.tanh(
        0.7978845608028654 * ref_h * (1.0 + 0.044715 * ref_h * ref_h)))
    ref = (ref_g.astype(jnp.bfloat16).astype(f32) @ w2b + b2).reshape(B, S, H)
    assert jnp.allclose(out, ref, atol=2e-3, rtol=2e-3), "mismatch vs reference"

    print("KERNEL_OK")
</pallas_src>

<mosaic_0001>
module attributes {stable_mosaic.version = 11 : i64} {
  func.func @_mlp_kernel(%arg0: i32, %arg1: i32, %arg2: memref<16x32xbf16, #tpu.memory_space<vmem>>, %arg3: memref<32x128xbf16, #tpu.memory_space<vmem>>, %arg4: memref<1x128xf32, #tpu.memory_space<vmem>>, %arg5: memref<128x32xbf16, #tpu.memory_space<vmem>>, %arg6: memref<1x32xf32, #tpu.memory_space<vmem>>, %arg7: memref<16x32xf32, #tpu.memory_space<vmem>>, %arg8: memref<16x32xf32, #tpu.memory_space<vmem>>) attributes {dimension_semantics = [#tpu.dimension_semantics<parallel>, #tpu.dimension_semantics<arbitrary>], iteration_bounds = array<i64: 1, 1>, scalar_prefetch = 0 : i64, scratch_operands = 1 : i64, tpu.core_type = #tpu.core_type<tc>, window_params = [{transform_indices = @transform_0, window_bounds = array<i64: 16, 32>}, {transform_indices = @transform_1, window_bounds = array<i64: 32, 128>}, {transform_indices = @transform_2, window_bounds = array<i64: 1, 128>}, {transform_indices = @transform_3, window_bounds = array<i64: 128, 32>}, {pipeline_mode = #tpu.pipeline_mode<synchronous>, transform_indices = @transform_4, window_bounds = array<i64: 1, 32>}, {transform_indices = @transform_5, window_bounds = array<i64: 16, 32>}]} {
    %c0 = arith.constant 0 : index
    %c0_0 = arith.constant 0 : index
    %0 = vector.load %arg2[%c0, %c0_0] : memref<16x32xbf16, #tpu.memory_space<vmem>>, vector<16x32xbf16>
    %c0_1 = arith.constant 0 : index
    %c0_2 = arith.constant 0 : index
    %1 = vector.load %arg3[%c0_1, %c0_2] : memref<32x128xbf16, #tpu.memory_space<vmem>>, vector<32x128xbf16>
    %cst = arith.constant dense<0.000000e+00> : vector<16x128xf32>
    %2 = tpu.matmul %0, %1, %cst {dimension_numbers = #tpu.dot_dimension_numbers<[1], [0], [0], [1], [0, 0, 1, 1], [], []>} : vector<16x32xbf16>, vector<32x128xbf16>, vector<16x128xf32> -> vector<16x128xf32>
    %c0_3 = arith.constant 0 : index
    %c0_4 = arith.constant 0 : index
    %3 = vector.load %arg4[%c0_3, %c0_4] : memref<1x128xf32, #tpu.memory_space<vmem>>, vector<1x128xf32>
    %4 = vector.broadcast %3 : vector<1x128xf32> to vector<16x128xf32>
    %5 = arith.addf %2, %4 : vector<16x128xf32>
    %cst_5 = arith.constant 5.000000e-01 : f32
    %6 = vector.broadcast %cst_5 : f32 to vector<16x128xf32>
    %7 = arith.mulf %6, %5 : vector<16x128xf32>
    %cst_6 = arith.constant 0.797884583 : f32
    %8 = vector.broadcast %cst_6 : f32 to vector<16x128xf32>
    %9 = arith.mulf %8, %5 : vector<16x128xf32>
    %cst_7 = arith.constant 4.471500e-02 : f32
    %10 = vector.broadcast %cst_7 : f32 to vector<16x128xf32>
    %11 = arith.mulf %10, %5 : vector<16x128xf32>
    %12 = arith.mulf %11, %5 : vector<16x128xf32>
    %cst_8 = arith.constant 1.000000e+00 : f32
    %13 = vector.broadcast %cst_8 : f32 to vector<16x128xf32>
    %14 = arith.addf %13, %12 : vector<16x128xf32>
    %15 = arith.mulf %9, %14 : vector<16x128xf32>
    %16 = math.tanh %15 : vector<16x128xf32>
    %cst_9 = arith.constant 1.000000e+00 : f32
    %17 = vector.broadcast %cst_9 : f32 to vector<16x128xf32>
    %18 = arith.addf %17, %16 : vector<16x128xf32>
    %19 = arith.mulf %7, %18 : vector<16x128xf32>
    %20 = arith.truncf %19 : vector<16x128xf32> to vector<16x128xbf16>
    %c0_10 = arith.constant 0 : index
    %c0_11 = arith.constant 0 : index
    %21 = vector.load %arg5[%c0_10, %c0_11] : memref<128x32xbf16, #tpu.memory_space<vmem>>, vector<128x32xbf16>
    %cst_12 = arith.constant dense<0.000000e+00> : vector<16x32xf32>
    %22 = tpu.matmul %20, %21, %cst_12 {dimension_numbers = #tpu.dot_dimension_numbers<[1], [0], [0], [1], [0, 0, 1, 1], [], []>} : vector<16x128xbf16>, vector<128x32xbf16>, vector<16x32xf32> -> vector<16x32xf32>
    %c0_i32 = arith.constant 0 : i32
    %23 = arith.cmpi eq, %arg1, %c0_i32 : i32
    %24 = arith.extui %23 : i1 to i32
    %c0_i32_13 = arith.constant 0 : i32
    %25 = arith.cmpi ne, %24, %c0_i32_13 : i32
    scf.if %25 {
      %c0_18 = arith.constant 0 : index
      %c0_19 = arith.constant 0 : index
      %32 = vector.load %arg8[%c0_18, %c0_19] : memref<16x32xf32, #tpu.memory_space<vmem>>, vector<16x32xf32>
      tpu.vector_store %arg8[%c0_18, %c0_19], %22 {strides = array<i32>} : memref<16x32xf32, #tpu.memory_space<vmem>>, vector<16x32xf32>,
    } else {
    }
    %c0_i32_14 = arith.constant 0 : i32
    %26 = arith.cmpi sgt, %arg1, %c0_i32_14 : i32
    %27 = arith.extui %26 : i1 to i32
    %c0_i32_15 = arith.constant 0 : i32
    %28 = arith.cmpi ne, %27, %c0_i32_15 : i32
    scf.if %28 {
      %c0_18 = arith.constant 0 : index
      %c0_19 = arith.constant 0 : index
      %32 = vector.load %arg8[%c0_18, %c0_19] : memref<16x32xf32, #tpu.memory_space<vmem>>, vector<16x32xf32>
      %33 = arith.addf %32, %22 : vector<16x32xf32>
      %c0_20 = arith.constant 0 : index
      %c0_21 = arith.constant 0 : index
      %34 = vector.load %arg8[%c0_20, %c0_21] : memref<16x32xf32, #tpu.memory_space<vmem>>, vector<16x32xf32>
      tpu.vector_store %arg8[%c0_20, %c0_21], %33 {strides = array<i32>} : memref<16x32xf32, #tpu.memory_space<vmem>>, vector<16x32xf32>,
    } else {
    }
    %c0_i32_16 = arith.constant 0 : i32
    %29 = arith.cmpi eq, %arg1, %c0_i32_16 : i32
    %30 = arith.extui %29 : i1 to i32
    %c0_i32_17 = arith.constant 0 : i32
    %31 = arith.cmpi ne, %30, %c0_i32_17 : i32
    scf.if %31 {
      %c0_18 = arith.constant 0 : index
      %c0_19 = arith.constant 0 : index
      %32 = vector.load %arg8[%c0_18, %c0_19] : memref<16x32xf32, #tpu.memory_space<vmem>>, vector<16x32xf32>
      %c0_20 = arith.constant 0 : index
      %c0_21 = arith.constant 0 : index
      %33 = vector.load %arg6[%c0_20, %c0_21] : memref<1x32xf32, #tpu.memory_space<vmem>>, vector<1x32xf32>
      %34 = vector.broadcast %33 : vector<1x32xf32> to vector<16x32xf32>
      %35 = arith.addf %32, %34 : vector<16x32xf32>
      %c0_22 = arith.constant 0 : index
      %c0_23 = arith.constant 0 : index
      %36 = vector.load %arg7[%c0_22, %c0_23] : memref<16x32xf32, #tpu.memory_space<vmem>>, vector<16x32xf32>
      tpu.vector_store %arg7[%c0_22, %c0_23], %35 {strides = array<i32>} : memref<16x32xf32, #tpu.memory_space<vmem>>, vector<16x32xf32>,
    } else {
    }
    return
  }
  func.func @transform_0(%arg0: i32, %arg1: i32) -> (i32, i32) {
    %c0_i32 = arith.constant 0 : i32
    %c0_i32_0 = arith.constant 0 : i32
    return %arg0, %c0_i32 : i32, i32
  }
  func.func @transform_1(%arg0: i32, %arg1: i32) -> (i32, i32) {
    %c0_i32 = arith.constant 0 : i32
    %c0_i32_0 = arith.constant 0 : i32
    return %c0_i32, %arg1 : i32, i32
  }
  func.func @transform_2(%arg0: i32, %arg1: i32) -> (i32, i32) {
    %c0_i32 = arith.constant 0 : i32
    %c0_i32_0 = arith.constant 0 : i32
    return %c0_i32, %arg1 : i32, i32
  }
  func.func @transform_3(%arg0: i32, %arg1: i32) -> (i32, i32) {
    %c0_i32 = arith.constant 0 : i32
    %c0_i32_0 = arith.constant 0 : i32
    return %arg1, %c0_i32 : i32, i32
  }
  func.func @transform_4(%arg0: i32, %arg1: i32) -> (i32, i32) {
    %c0_i32 = arith.constant 0 : i32
    %c0_i32_0 = arith.constant 0 : i32
    %c0_i32_1 = arith.constant 0 : i32
    return %c0_i32, %c0_i32_0 : i32, i32
  }
  func.func @transform_5(%arg0: i32, %arg1: i32) -> (i32, i32) {
    %c0_i32 = arith.constant 0 : i32
    %c0_i32_0 = arith.constant 0 : i32
    return %arg0, %c0_i32 : i32, i32
  }
}

</mosaic_0001>

<bundles_post_ra>
// kernel: tpu_custom_call.1
= control target key start
LH: loop header
LB: loop body
LE: loop exit
PB: predicated region body
PF: predicated region fallthrough
CT: control target
= control target key end

     0   :  { %v365_v1 = vmov 0.0   ;;  %vm366_vm0 = vmmov 0   ;;  %vm52_vm1 = vcmask 261120   ;;  %s447_s0 = inlined_call_operand.vmem [shape: bf16[16,32], index: 0, kind: input, shape index: {}]   ;;  %s448_s1 = inlined_call_operand.vmem [shape: bf16[32,128], index: 1, kind: input, shape index: {}]   ;;  %s449_s2 = inlined_call_operand.vmem [shape: f32[1,128], index: 2, kind: input, shape index: {}]   ;;  %s450_s3 = inlined_call_operand.vmem [shape: bf16[128,32], index: 3, kind: input, shape index: {}]   ;;  %s451_s4 = inlined_call_operand.vmem [shape: f32[1,32], index: 4, kind: input, shape index: {}]   ;;  %s452_s5 = inlined_call_operand.hbm [shape: f32[16,32], index: 5, kind: output, shape index: {}]  }
   0x1   :  { %v328_v0 = vld [vmem:[%s448_s1 + $0x8] sm:$0xff]   ;;  %295 = vmatprep.subr.bf16.mxu0 %v365_v1  ;;  %303 = vmatprep.subr.bf16.mxu1 %v365_v1  ;;  %v329_v2 = vld [vmem:[%s448_s1] sm:$0xff]  }
   0x2   :  { %296 = vmatpush3.bf16.msra.mxu0 %v328_v0  ;;  %299 = vmatprep.mubr.msk.bf16.mxu0 %vm366_vm0, %v365_v1  ;;  %v330_v3 = vld [vmem:[%s447_s0] sm:$0xff]  }
   0x3   :  { %297 = vmatprep.subr.bf16.mxu0 %v365_v1  ;;  %319 = vmatprep.mubr.msk.bf16.mxu1 %vm366_vm0, %v365_v1 }
   0x6   :  { %298 = vmatpush3.bf16.msra.mxu0 %v329_v2 }
   0x7   :  { %10 = vsyncpa [#allocation4], 0  ;;  %v331_v4 = vld [vmem:[%s450_s3 + $0x38] sm:$0xff]   ;;  %v332_v5 = vld [vmem:[%s450_s3 + $0x30] sm:$0xff]   ;;  %s367_s15 = smov [#allocation3]  }
   0x8   :  { %304 = vmatpush3.bf16.msra.mxu1 %v331_v4  ;;  %v333_v6 = vld [vmem:[%s450_s3 + $0x28] sm:$0xff]   ;;  %v334_v7 = vld [vmem:[%s450_s3 + $0x20] sm:$0xff]   ;;  %v335_v8 = vld [vmem:[%s450_s3 + $0x18] sm:$0xff]   ;;  %s258_s16 = sshll.u32 %s367_s15, 4  ;;  %s259_s16 = int_to_ptr.vmem [resolvable:$true] %s258_s16 }
   0x9   :  { %300 = vmatmul.mubr.msk.bf16.vlgmr.msra.gmra.mxu0 %vm52_vm1, %v330_v3  ;;  %305 = vmatprep.subr.bf16.mxu1 %v365_v1  ;;  %v336_v9 = vld [vmem:[%s450_s3 + $0x10] sm:$0xff]   ;;  %v337_v10 = vld [vmem:[%s450_s3 + $0x8] sm:$0xff]   ;;  %v338_v11 = vld [vmem:[%s450_s3] sm:$0xff]   ;;  %s343_s17 = scalar_lea.vmem %s259_s16, 256  ;;  %p348_p1 = scmp.lt.s32.totalorder %s259_s16, %s259_s16 }
   0xa   :  { %v269_v12 = vld [vmem:[%s449_s2] ss:$0 sm:$0xff]  ;;  %p344_p0 = scmp.ne.s32.totalorder %s259_s16, %s343_s17  ;;  %p349_p2 = scmp.lt.s32.totalorder %s343_s17, %s343_s17 }
   0xb   :  { %v282_v42 = vld [vmem:[%s451_s4] ss:$0 sm:$0xff] }
   0xc   :  { %306 = vmatpush3.bf16.msra.mxu1 %v332_v5  ;;  %p350_p3 = por %p349_p2, %p348_p1 }
   0xd   :  { %307 = vmatprep.subr.bf16.mxu1 %v365_v1 }
   0xe   :  { %p351_p4 = pnand %p350_p3, %p344_p0 }
  0x10   :  { %308 = vmatpush3.bf16.msra.mxu1 %v333_v6 }
  0x11   :  { %309 = vmatprep.subr.bf16.mxu1 %v365_v1 }
  0x14   :  { %310 = vmatpush3.bf16.msra.mxu1 %v334_v7 }
  0x15   :  { %311 = vmatprep.subr.bf16.mxu1 %v365_v1 }
  0x18   :  { %312 = vmatpush3.bf16.msra.mxu1 %v335_v8 }
  0x19   :  { %313 = vmatprep.subr.bf16.mxu1 %v365_v1 }
  0x1c   :  { %314 = vmatpush3.bf16.msra.mxu1 %v336_v9 }
  0x1d   :  { %315 = vmatprep.subr.bf16.mxu1 %v365_v1 }
  0x20   :  { %316 = vmatpush3.bf16.msra.mxu1 %v337_v10 }
  0x21   :  { %317 = vmatprep.subr.bf16.mxu1 %v365_v1 }
  0x24   :  { %318 = vmatpush3.bf16.msra.mxu1 %v338_v11 }
  0xc9   :  { %v90_v13 = vpop.f32.mrf.mxu0 }
  0xca   :  { %v91_v14 = vadd.f32 %v269_v12, %v90_v13 }
  0xcb   :  { %v301_v15 = vpop.f32.mrf.mxu0 }
  0xcc   :  { %v101_v16 = vmul.f32 0.044715, %v91_v14  ;;  %v99_v21 = vmul.f32 0.7978846, %v91_v14  ;;  %v97_v32 = vmul.f32 0.5, %v91_v14 }
  0xcd   :  { %v93_v17 = vpop.f32.mrf.mxu0 }
  0xce   :  { %v103_v18 = vmul.f32 %v101_v16, %v91_v14  ;;  %v94_v19 = vadd.f32 %v269_v12, %v93_v17 }
  0xcf   :  { %v302_v20 = vpop.f32.mrf.mxu0 }
  0xd0   :  { %v105_v22 = vadd.f32 1.0, %v103_v18  ;;  %v102_v23 = vmul.f32 0.044715, %v94_v19  ;;  %v100_v26 = vmul.f32 0.7978846, %v94_v19  ;;  %v98_v33 = vmul.f32 0.5, %v94_v19 }
  0xd2   :  { %v107_v24 = vmul.f32 %v105_v22, %v99_v21  ;;  %v104_v25 = vmul.f32 %v102_v23, %v94_v19 }
  0xd4   :  { %339 = vtanh.f32 %v107_v24  ;;  %v106_v27 = vadd.f32 1.0, %v104_v25 }
  0xd6   :  { %v108_v28 = vmul.f32 %v106_v27, %v100_v26 }
  0xd8   :  { %341 = vtanh.f32 %v108_v28 }
  0xe1   :  { %v340_v29 = vpop.eup %339 }
  0xe2   :  { %v111_v30 = vadd.f32 1.0, %v340_v29 }
  0xe4   :  { %v113_v35 = vmul.f32 %v111_v30, %v97_v32 }
  0xe5   :  { %v342_v31 = vpop.eup %341 }
  0xe6   :  { %v112_v34 = vadd.f32 1.0, %v342_v31 }
  0xe8   :  { %v114_v36 = vmul.f32 %v112_v34, %v98_v33 }
  0xea   :  { %v115_v37 = vpack.c.bf16 %v114_v36, %v113_v35 }
  0xec   :  { %320 = vmatmul.mubr.bf16.vlgmr.msra.gmra.mxu1 %v115_v37 }
 0x1ac   :  { %v214_v38 = vpop.f32.mrf.mxu1 }
 0x1ad   :  { %225 = vst.msk [vmem:[#allocation2] sm:$0xff] %vm52_vm1, %v214_v38 }
 0x1ae   :  { %v321_v39 = vpop.f32.mrf.mxu1 }
 0x1b0   :  { %v217_v40 = vpop.f32.mrf.mxu1 }
 0x1b1   :  { %226 = vst.msk [vmem:[#allocation2 + $0x8] sm:$0xff] %vm52_vm1, %v217_v40 }
 0x1b2   :  { %v322_v41 = vpop.f32.mrf.mxu1 }
 0x1b4   :  { %v240_v43 = vld [vmem:[#allocation2] sm:$0xff] }
 0x1b5   :  { %v249_v44 = vadd.f32 %v282_v42, %v240_v43 }
 0x1b7   :  { %251 = vst.msk [vmem:[#allocation3] sm:$0xff] %vm52_vm1, %v249_v44 }
 0x1b8   :  { %v241_v45 = vld [vmem:[#allocation2 + $0x8] sm:$0xff] }
 0x1b9   :  { %v250_v46 = vadd.f32 %v282_v42, %v241_v45 }
 0x1bb   :  { %252 = vst.msk [vmem:[#allocation3 + $0x8] sm:$0xff] %vm52_vm1, %v250_v46 }
 0x1bc   :  { %354 = shalt.err (!%p351_p4)
}
 0x1bd   :  { %s368_s18 = smov 128   ;;  %s369_s4 = smov 8  }
 0x1be   :  { %264 = dma.vmem_to_hbm [thread:$0]  %s259_s16, 256, %s452_s5, [#allocation4], %s368_s18, %s368_s18, %s369_s4  }
 0x1bf   :  { %363 = dma.done.wait [#allocation4], 256  }
 0x1c0   :  { %364 = vsyncadd [#allocation4], 4294967040 }
 0x1c1   :  { %268 = vsyncpa [#allocation4], 1 }

</bundles_post_ra>
